<compile_context>
chip_gen: v7x
topology: tpu7x:2x2x1
jax: 0.10.0
libtpu: 0.0.40
codegen_flags: <defaults>
</compile_context>

<pallas_src>
import numpy as np
import jax
import jax.numpy as jnp
from jax.experimental import pallas as pl
from jax.experimental.pallas import tpu as pltpu

RESIZE_SIZE = 75          # torchvision Resize(size=75): smaller edge -> 75
INV_255 = 1.0 / 255.0


def _bilinear_matrix(in_size: int, out_size: int) -> np.ndarray:
    """Row-interpolation matrix W (out_size, in_size) s.t. y = W @ x reproduces
    torch bilinear resize (align_corners=False, no antialias)."""
    scale = in_size / out_size
    dst = np.arange(out_size, dtype=np.float64)
    src = (dst + 0.5) * scale - 0.5
    src = np.clip(src, 0.0, in_size - 1)
    lo = np.floor(src).astype(np.int64)
    hi = np.minimum(lo + 1, in_size - 1)
    frac = src - lo
    w = np.zeros((out_size, in_size), dtype=np.float32)
    w[np.arange(out_size), lo] += (1.0 - frac).astype(np.float32)
    w[np.arange(out_size), hi] += frac.astype(np.float32)
    return w


def _pick_batch_tile(b: int, h_in: int, w_in: int, h_out: int, w_out: int,
                     budget_bytes: int = 8 << 20) -> int:
    """Largest TB that (a) divides b and (b) keeps double-buffered
    input (bf16) + output (f32) tiles under `budget_bytes` (safe for the
    16 MiB v5e / 32 MiB v6e-v7x scoped-VMEM defaults)."""
    per_img = 2 * (h_in * w_in * 2 + h_out * w_out * 4)   # 2x = double buffer
    tb = max(1, min(b, budget_bytes // max(per_img, 1)))
    while b % tb:
        tb -= 1
    return tb


def _resize_kernel(x_ref, wh_ref, wwt_ref, o_ref):
    # x_ref:   (TB, H_in, W_in)   bf16 channel-0 planes
    # wh_ref:  (H_out, H_in)      row-interp matrix, with 1/255 folded in
    # wwt_ref: (W_in,  W_out)     column-interp matrix (transposed)
    # o_ref:   (TB, H_out, W_out) f32
    wh = wh_ref[...]
    wwt = wwt_ref[...]
    tb = x_ref.shape[0]
    for i in range(tb):                                   # static, fully unrolled
        x = x_ref[i].astype(jnp.float32)                  # (H_in, W_in)
        t = jnp.dot(wh, x, preferred_element_type=jnp.float32)      # (H_out, W_in)
        o_ref[i] = jnp.dot(t, wwt, preferred_element_type=jnp.float32)


def encoder_forward(observation: jax.Array) -> jax.Array:
    """observation: (B, H, W, C) float with pixel values in [0, 255]."""
    obs = jnp.asarray(observation)
    b, h, w, _c = obs.shape

    # permute(0,3,1,2) then [:, 0, :, :]  ==  NHWC channel 0  (resize is
    # per-channel, so selecting before the resize is equivalent).  bf16 halves
    # the dominant HBM read and is exact for uint8-derived pixel values.
    x = obs[..., 0].astype(jnp.bfloat16)                  # (B, H, W)

    # torchvision Resize(size=int): smaller edge -> size, other edge scaled.
    if h <= w:
        h_out, w_out = RESIZE_SIZE, int(RESIZE_SIZE * w / h)
    else:
        h_out, w_out = int(RESIZE_SIZE * h / w), RESIZE_SIZE

    # Fold the /255 into the (host-built, compile-time) row-interp matrix.
    wh = jnp.asarray(_bilinear_matrix(h, h_out) * np.float32(INV_255))  # (H_out, H)
    wwt = jnp.asarray(_bilinear_matrix(w, w_out).T)                     # (W, W_out)

    tb = _pick_batch_tile(b, h, w, h_out, w_out)
    grid = (b // tb,)

    out = pl.pallas_call(
        _resize_kernel,
        out_shape=jax.ShapeDtypeStruct((b, h_out, w_out), jnp.float32),
        grid=grid,
        in_specs=[
            pl.BlockSpec((tb, h, w), lambda i: (i, 0, 0)),
            # Constant block index along the batch axis -> weights stay
            # resident in VMEM for the whole grid (no re-DMA per step).
            pl.BlockSpec((h_out, h), lambda i: (0, 0)),
            pl.BlockSpec((w, w_out), lambda i: (0, 0)),
        ],
        out_specs=pl.BlockSpec((tb, h_out, w_out), lambda i: (i, 0, 0)),
        compiler_params=pltpu.CompilerParams(
            dimension_semantics=("parallel",)),   # independent images; v7x: 2 TCs
    )(x, wh, wwt)

    # torch.reshape(tensor, (num_batches, -1))
    return out.reshape(b, -1)


# TODO(synk): the frozen pretrained AlexNet (self.observation_encoder) is built in
# __init__ but never used in forward(), so no conv/classifier weights are needed.

if __name__ == "__main__":
    key = jax.random.PRNGKey(0)
    # Small Pong-like observation batch: (B=2, H=16, W=16, C=3), uint8-valued
    # pixels in [0, 255] (matches real Atari frames; exact under bf16).
    obs = jax.random.randint(key, (2, 16, 16, 3), 0, 256, jnp.int32).astype(jnp.float32)

    out = encoder_forward(obs)
    out = jax.block_until_ready(out)

    # Pure-JAX reference of the same math for a sanity check.
    h, w = obs.shape[1], obs.shape[2]
    wh_ref = jnp.asarray(_bilinear_matrix(h, RESIZE_SIZE))
    wwt_ref = jnp.asarray(_bilinear_matrix(w, RESIZE_SIZE).T)
    ref = jnp.einsum("oh,bhw,wn->bon", wh_ref, obs[..., 0], wwt_ref) * INV_255
    ref = ref.reshape(obs.shape[0], -1)

    assert out.shape == (2, RESIZE_SIZE * RESIZE_SIZE), out.shape
    np.testing.assert_allclose(np.asarray(out), np.asarray(ref), rtol=1e-5, atol=1e-5)
    print("KERNEL_OK")
</pallas_src>

<mosaic_0001>
module attributes {stable_mosaic.version = 11 : i64} {
  func.func @_resize_kernel(%arg0: i32, %arg1: memref<2x16x16xbf16, #tpu.memory_space<vmem>>, %arg2: memref<75x16xf32, #tpu.memory_space<vmem>>, %arg3: memref<16x75xf32, #tpu.memory_space<vmem>>, %arg4: memref<2x75x75xf32, #tpu.memory_space<vmem>>) attributes {dimension_semantics = [#tpu.dimension_semantics<parallel>], iteration_bounds = array<i64: 1>, scalar_prefetch = 0 : i64, scratch_operands = 0 : i64, tpu.core_type = #tpu.core_type<tc>, window_params = [{transform_indices = @transform_0, window_bounds = array<i64: 2, 16, 16>}, {pipeline_mode = #tpu.pipeline_mode<synchronous>, transform_indices = @transform_1, window_bounds = array<i64: 75, 16>}, {pipeline_mode = #tpu.pipeline_mode<synchronous>, transform_indices = @transform_2, window_bounds = array<i64: 16, 75>}, {transform_indices = @transform_3, window_bounds = array<i64: 2, 75, 75>}]} {
    %c0 = arith.constant 0 : index
    %c0_0 = arith.constant 0 : index
    %0 = vector.load %arg2[%c0, %c0_0] : memref<75x16xf32, #tpu.memory_space<vmem>>, vector<75x16xf32>
    %c0_1 = arith.constant 0 : index
    %c0_2 = arith.constant 0 : index
    %1 = vector.load %arg3[%c0_1, %c0_2] : memref<16x75xf32, #tpu.memory_space<vmem>>, vector<16x75xf32>
    %c0_3 = arith.constant 0 : index
    %c0_4 = arith.constant 0 : index
    %c0_5 = arith.constant 0 : index
    %2 = vector.load %arg1[%c0_3, %c0_4, %c0_5] : memref<2x16x16xbf16, #tpu.memory_space<vmem>>, vector<1x16x16xbf16>
    %3 = vector.shape_cast %2 : vector<1x16x16xbf16> to vector<16x16xbf16>
    %4 = arith.extf %3 : vector<16x16xbf16> to vector<16x16xf32>
    %cst = arith.constant dense<0.000000e+00> : vector<75x16xf32>
    %5 = tpu.matmul %0, %4, %cst {dimension_numbers = #tpu.dot_dimension_numbers<[1], [0], [0], [1], [0, 0, 1, 1], [], []>} : vector<75x16xf32>, vector<16x16xf32>, vector<75x16xf32> -> vector<75x16xf32>
    %cst_6 = arith.constant dense<0.000000e+00> : vector<75x75xf32>
    %6 = tpu.matmul %5, %1, %cst_6 {dimension_numbers = #tpu.dot_dimension_numbers<[1], [0], [0], [1], [0, 0, 1, 1], [], []>} : vector<75x16xf32>, vector<16x75xf32>, vector<75x75xf32> -> vector<75x75xf32>
    %c0_7 = arith.constant 0 : index
    %c0_8 = arith.constant 0 : index
    %c0_9 = arith.constant 0 : index
    %7 = vector.load %arg4[%c0_7, %c0_8, %c0_9] : memref<2x75x75xf32, #tpu.memory_space<vmem>>, vector<1x75x75xf32>
    %8 = vector.shape_cast %7 : vector<1x75x75xf32> to vector<75x75xf32>
    %9 = vector.shape_cast %6 : vector<75x75xf32> to vector<1x75x75xf32>
    tpu.vector_store %arg4[%c0_7, %c0_8, %c0_9], %9 {strides = array<i32>} : memref<2x75x75xf32, #tpu.memory_space<vmem>>, vector<1x75x75xf32>,
    %c1 = arith.constant 1 : index
    %c0_10 = arith.constant 0 : index
    %c0_11 = arith.constant 0 : index
    %10 = vector.load %arg1[%c1, %c0_10, %c0_11] : memref<2x16x16xbf16, #tpu.memory_space<vmem>>, vector<1x16x16xbf16>
    %11 = vector.shape_cast %10 : vector<1x16x16xbf16> to vector<16x16xbf16>
    %12 = arith.extf %11 : vector<16x16xbf16> to vector<16x16xf32>
    %cst_12 = arith.constant dense<0.000000e+00> : vector<75x16xf32>
    %13 = tpu.matmul %0, %12, %cst_12 {dimension_numbers = #tpu.dot_dimension_numbers<[1], [0], [0], [1], [0, 0, 1, 1], [], []>} : vector<75x16xf32>, vector<16x16xf32>, vector<75x16xf32> -> vector<75x16xf32>
    %cst_13 = arith.constant dense<0.000000e+00> : vector<75x75xf32>
    %14 = tpu.matmul %13, %1, %cst_13 {dimension_numbers = #tpu.dot_dimension_numbers<[1], [0], [0], [1], [0, 0, 1, 1], [], []>} : vector<75x16xf32>, vector<16x75xf32>, vector<75x75xf32> -> vector<75x75xf32>
    %c1_14 = arith.constant 1 : index
    %c0_15 = arith.constant 0 : index
    %c0_16 = arith.constant 0 : index
    %15 = vector.load %arg4[%c1_14, %c0_15, %c0_16] : memref<2x75x75xf32, #tpu.memory_space<vmem>>, vector<1x75x75xf32>
    %16 = vector.shape_cast %15 : vector<1x75x75xf32> to vector<75x75xf32>
    %17 = vector.shape_cast %14 : vector<75x75xf32> to vector<1x75x75xf32>
    tpu.vector_store %arg4[%c1_14, %c0_15, %c0_16], %17 {strides = array<i32>} : memref<2x75x75xf32, #tpu.memory_space<vmem>>, vector<1x75x75xf32>,
    return
  }
  func.func @transform_0(%arg0: i32) -> (i32, i32, i32) {
    %c0_i32 = arith.constant 0 : i32
    %c0_i32_0 = arith.constant 0 : i32
    %c0_i32_1 = arith.constant 0 : i32
    return %arg0, %c0_i32, %c0_i32_0 : i32, i32, i32
  }
  func.func @transform_1(%arg0: i32) -> (i32, i32) {
    %c0_i32 = arith.constant 0 : i32
    %c0_i32_0 = arith.constant 0 : i32
    %c0_i32_1 = arith.constant 0 : i32
    return %c0_i32, %c0_i32_0 : i32, i32
  }
  func.func @transform_2(%arg0: i32) -> (i32, i32) {
    %c0_i32 = arith.constant 0 : i32
    %c0_i32_0 = arith.constant 0 : i32
    %c0_i32_1 = arith.constant 0 : i32
    return %c0_i32, %c0_i32_0 : i32, i32
  }
  func.func @transform_3(%arg0: i32) -> (i32, i32, i32) {
    %c0_i32 = arith.constant 0 : i32
    %c0_i32_0 = arith.constant 0 : i32
    %c0_i32_1 = arith.constant 0 : i32
    return %arg0, %c0_i32, %c0_i32_0 : i32, i32, i32
  }
}

</mosaic_0001>

<bundles_post_ra>
// kernel: tpu_custom_call.1
= control target key start
LH: loop header
LB: loop body
LE: loop exit
PB: predicated region body
PF: predicated region fallthrough
CT: control target
= control target key end

     0   :  { %vm30_vm0 = vcmask 130048   ;;  %vm321_vm1 = vcmask 613376   ;;  %vm331_vm2 = vcmask 608256   ;;  %s996_s0 = inlined_call_operand.vmem [shape: bf16[2,16,16], index: 0, kind: input, shape index: {}]   ;;  %s997_s1 = inlined_call_operand.vmem [shape: f32[75,16], index: 1, kind: input, shape index: {}]   ;;  %s998_s2 = inlined_call_operand.vmem [shape: f32[16,75], index: 2, kind: input, shape index: {}]   ;;  %s999_s3 = inlined_call_operand.vmem [shape: f32[2,75,75], index: 3, kind: output, shape index: {}]  }
   0x1   :  { %v666_v0 = vld [vmem:[%s996_s0] sm:$0xff]   ;;  %v673_v2 = vld [vmem:[%s996_s0 + $0x8] sm:$0xff]   ;;  %v16_v4 = vld [vmem:[%s997_s1 + $0x10] sm:$0xff] }
   0x2   :  { %v14_v1 = vld [vmem:[%s997_s1] sm:$0xff]  ;;  %799 = vmatprep.subr.bf16.mxu0 %v666_v0  ;;  %v15_v3 = vld [vmem:[%s997_s1 + $0x8] sm:$0xff]  ;;  %v17_v8 = vld [vmem:[%s997_s1 + $0x18] sm:$0xff] }
   0x3   :  { %726 = vmatprep.mubr.msk.f32.mxu0 %vm30_vm0, %v14_v1  ;;  %801 = vmatpush3.bf16.msra.mxu0 %v666_v0  ;;  %v24_v5 = vld [vmem:[%s998_s2] sm:$0xff]  ;;  %v25_v6 = vld [vmem:[%s998_s2 + $0x8] sm:$0xff]  ;;  %v20_v11 = vld [vmem:[%s997_s1 + $0x30] sm:$0xff] }
   0x4   :  { %807 = vmatprep.subr.bf16.mxu0 %v673_v2  ;;  %v802_v7 = vpack.c.bf16 %v25_v6, %v24_v5  ;;  %v18_v9 = vld [vmem:[%s997_s1 + $0x20] sm:$0xff]  ;;  %v19_v10 = vld [vmem:[%s997_s1 + $0x28] sm:$0xff]  ;;  %v21_v12 = vld [vmem:[%s997_s1 + $0x38] sm:$0xff] }
   0x5   :  { %v22_v13 = vld [vmem:[%s997_s1 + $0x40] sm:$0xff]  ;;  %v23_v14 = vld [vmem:[%s997_s1 + $0x48] sm:$0x7] }
   0x6   :  { %727 = vmatmul.mubr.msk.f32.vlgmr.msra.gmra.mrb[0].mxu0 %vm30_vm0, %v15_v3  ;;  %803 = vmatprep.subr.bf16.mxu1 %v802_v7 }
   0x7   :  { %809 = vmatpush3.bf16.msra.mxu0 %v673_v2  ;;  %729 = vmatprep.mubr.msk.f32.mxu0 %vm30_vm0, %v16_v4 }
   0x8   :  { %805 = vmatpush3.bf16.msra.mxu1 %v802_v7 }
   0x9   :  { %811 = vmatprep.subr.bf16.mxu1 %v802_v7 }
   0xa   :  { %730 = vmatmul.mubr.msk.f32.gmra.mrb[2].mxu0 %vm30_vm0, %v17_v8 }
   0xb   :  { %732 = vmatprep.mubr.msk.f32.mxu0 %vm30_vm0, %v18_v9 }
   0xe   :  { %733 = vmatmul.mubr.msk.f32.gmra.mrb[4].mxu0 %vm30_vm0, %v19_v10 }
   0xf   :  { %735 = vmatprep.mubr.msk.f32.mxu0 %vm30_vm0, %v20_v11 }
  0x12   :  { %736 = vmatmul.mubr.msk.f32.gmra.mrb[6].mxu0 %vm30_vm0, %v21_v12 }
  0x13   :  { %738 = vmatprep.mubr.msk.f32.mxu0 %vm30_vm0, %v22_v13 }
  0x16   :  { %739 = vmatmul.mubr.msk.f32.gmra.mrb[8].mxu0 %vm30_vm0, %v23_v14 }
  0x17   :  { %764 = vmatprep.mubr.msk.f32.mxu0 %vm30_vm0, %v14_v1 }
  0x1a   :  { %765 = vmatmul.mubr.msk.f32.vlgmr.msra.gmra.mrb[10].mxu0 %vm30_vm0, %v15_v3 }
  0x1b   :  { %767 = vmatprep.mubr.msk.f32.mxu0 %vm30_vm0, %v16_v4 }
  0x1e   :  { %768 = vmatmul.mubr.msk.f32.gmra.mrb[12].mxu0 %vm30_vm0, %v17_v8 }
  0x1f   :  { %770 = vmatprep.mubr.msk.f32.mxu0 %vm30_vm0, %v18_v9 }
  0x22   :  { %771 = vmatmul.mubr.msk.f32.gmra.mrb[14].mxu0 %vm30_vm0, %v19_v10 }
  0x23   :  { %773 = vmatprep.mubr.msk.f32.mxu0 %vm30_vm0, %v20_v11 }
  0x26   :  { %774 = vmatmul.mubr.msk.f32.gmra.mrb[16].mxu0 %vm30_vm0, %v21_v12 }
  0x27   :  { %776 = vmatprep.mubr.msk.f32.mxu0 %vm30_vm0, %v22_v13 }
  0x2a   :  { %777 = vmatmul.mubr.msk.f32.gmra.mrb[18].mxu0 %vm30_vm0, %v23_v14 }
  0xd9   :  { %v728_v15 = vpop.f32.mrb[0].mxu0 }
  0xda   :  { %v127_v16 = vpop.f32.mrb[1].mxu0 }
  0xdb   :  { %745 = vmatprep.mubr.msk.f32.mxu1 %vm30_vm0, %v127_v16 }
  0xdc   :  { %746 = vmatmul.mubr.msk.f32.vlgmr.msra.gmra.mrb[0].mxu1 %vm30_vm0, %v728_v15 }
  0xdd   :  { %v731_v17 = vpop.f32.mrb[2].mxu0  ;;  %813 = vmatpush3.bf16.msra.mxu1 %v802_v7 }
  0xde   :  { %v137_v18 = vpop.f32.mrb[3].mxu0 }
  0xdf   :  { %748 = vmatprep.mubr.msk.f32.mxu1 %vm30_vm0, %v137_v18 }
  0xe0   :  { %749 = vmatmul.mubr.msk.f32.gmra.mrb[2].mxu1 %vm30_vm0, %v731_v17 }
  0xe1   :  { %v734_v19 = vpop.f32.mrb[4].mxu0 }
  0xe2   :  { %v147_v20 = vpop.f32.mrb[5].mxu0 }
  0xe3   :  { %751 = vmatprep.mubr.msk.f32.mxu1 %vm30_vm0, %v147_v20 }
  0xe4   :  { %752 = vmatmul.mubr.msk.f32.gmra.mrb[4].mxu1 %vm30_vm0, %v734_v19 }
  0xe5   :  { %v737_v21 = vpop.f32.mrb[6].mxu0 }
  0xe6   :  { %v157_v22 = vpop.f32.mrb[7].mxu0 }
  0xe7   :  { %754 = vmatprep.mubr.msk.f32.mxu1 %vm30_vm0, %v157_v22 }
  0xe8   :  { %755 = vmatmul.mubr.msk.f32.gmra.mrb[6].mxu1 %vm30_vm0, %v737_v21 }
  0xe9   :  { %v740_v23 = vpop.f32.mrb[8].mxu0 }
  0xea   :  { %v167_v24 = vpop.f32.mrb[9].mxu0 }
  0xeb   :  { %757 = vmatprep.mubr.msk.f32.mxu1 %vm30_vm0, %v167_v24 }
  0xec   :  { %758 = vmatmul.mubr.msk.f32.gmra.mrb[8].mxu1 %vm30_vm0, %v740_v23 }
  0xed   :  { %v766_v25 = vpop.f32.mrb[10].mxu0 }
  0xee   :  { %v404_v26 = vpop.f32.mrb[11].mxu0 }
  0xef   :  { %783 = vmatprep.mubr.msk.f32.mxu1 %vm30_vm0, %v404_v26 }
  0xf0   :  { %784 = vmatmul.mubr.msk.f32.vlgmr.msra.gmra.mrb[10].mxu1 %vm30_vm0, %v766_v25 }
  0xf1   :  { %v769_v27 = vpop.f32.mrb[12].mxu0 }
  0xf2   :  { %v414_v28 = vpop.f32.mrb[13].mxu0 }
  0xf3   :  { %786 = vmatprep.mubr.msk.f32.mxu1 %vm30_vm0, %v414_v28 }
  0xf4   :  { %787 = vmatmul.mubr.msk.f32.gmra.mrb[12].mxu1 %vm30_vm0, %v769_v27 }
  0xf5   :  { %v772_v29 = vpop.f32.mrb[14].mxu0 }
  0xf6   :  { %v424_v30 = vpop.f32.mrb[15].mxu0 }
  0xf7   :  { %789 = vmatprep.mubr.msk.f32.mxu1 %vm30_vm0, %v424_v30 }
  0xf8   :  { %790 = vmatmul.mubr.msk.f32.gmra.mrb[14].mxu1 %vm30_vm0, %v772_v29 }
  0xf9   :  { %v775_v31 = vpop.f32.mrb[16].mxu0 }
  0xfa   :  { %v434_v32 = vpop.f32.mrb[17].mxu0 }
  0xfb   :  { %792 = vmatprep.mubr.msk.f32.mxu1 %vm30_vm0, %v434_v32 }
  0xfc   :  { %793 = vmatmul.mubr.msk.f32.gmra.mrb[16].mxu1 %vm30_vm0, %v775_v31 }
  0xfd   :  { %v778_v33 = vpop.f32.mrb[18].mxu0 }
  0xfe   :  { %v444_v34 = vpop.f32.mrb[19].mxu0 }
  0xff   :  { %795 = vmatprep.mubr.msk.f32.mxu1 %vm30_vm0, %v444_v34 }
 0x100   :  { %796 = vmatmul.mubr.msk.f32.gmra.mrb[18].mxu1 %vm30_vm0, %v778_v33 }
 0x1af   :  { %v747_v35 = vpop.f32.mrb[0].mxu1 }
 0x1b0   :  { %323 = vst.msk [vmem:[%s999_s3 + $0x8] sm:$0xff] %vm321_vm1, %v747_v35  ;;  %v272_v36 = vpop.f32.mrb[1].mxu1 }
 0x1b1   :  { %322 = vst.msk [vmem:[%s999_s3] sm:$0xff] %vm321_vm1, %v272_v36 }
 0x1b3   :  { %v750_v37 = vpop.f32.mrb[2].mxu1 }
 0x1b4   :  { %325 = vst.msk [vmem:[%s999_s3 + $0x18] sm:$0xff] %vm321_vm1, %v750_v37  ;;  %v282_v38 = vpop.f32.mrb[3].mxu1 }
 0x1b5   :  { %324 = vst.msk [vmem:[%s999_s3 + $0x10] sm:$0xff] %vm321_vm1, %v282_v38 }
 0x1b7   :  { %v753_v39 = vpop.f32.mrb[4].mxu1 }
 0x1b8   :  { %327 = vst.msk [vmem:[%s999_s3 + $0x28] sm:$0xff] %vm321_vm1, %v753_v39  ;;  %v292_v40 = vpop.f32.mrb[5].mxu1 }
 0x1b9   :  { %326 = vst.msk [vmem:[%s999_s3 + $0x20] sm:$0xff] %vm321_vm1, %v292_v40 }
 0x1bb   :  { %v756_v41 = vpop.f32.mrb[6].mxu1 }
 0x1bc   :  { %329 = vst.msk [vmem:[%s999_s3 + $0x38] sm:$0xff] %vm321_vm1, %v756_v41  ;;  %v302_v42 = vpop.f32.mrb[7].mxu1 }
 0x1bd   :  { %328 = vst.msk [vmem:[%s999_s3 + $0x30] sm:$0xff] %vm321_vm1, %v302_v42 }
 0x1bf   :  { %v759_v43 = vpop.f32.mrb[8].mxu1 }
 0x1c0   :  { %332 = vst.msk [vmem:[%s999_s3 + $0x48] sm:$0x7] %vm331_vm2, %v759_v43  ;;  %v312_v44 = vpop.f32.mrb[9].mxu1 }
 0x1c1   :  { %330 = vst.msk [vmem:[%s999_s3 + $0x40] sm:$0xff] %vm321_vm1, %v312_v44 }
 0x1c3   :  { %v785_v45 = vpop.f32.mrb[10].mxu1 }
 0x1c4   :  { %656 = vst.msk [vmem:[%s999_s3 + $0x58] sm:$0xff] %vm321_vm1, %v785_v45  ;;  %v549_v46 = vpop.f32.mrb[11].mxu1 }
 0x1c5   :  { %655 = vst.msk [vmem:[%s999_s3 + $0x50] sm:$0xff] %vm321_vm1, %v549_v46 }
 0x1c7   :  { %v788_v47 = vpop.f32.mrb[12].mxu1 }
 0x1c8   :  { %658 = vst.msk [vmem:[%s999_s3 + $0x68] sm:$0xff] %vm321_vm1, %v788_v47  ;;  %v559_v48 = vpop.f32.mrb[13].mxu1 }
 0x1c9   :  { %657 = vst.msk [vmem:[%s999_s3 + $0x60] sm:$0xff] %vm321_vm1, %v559_v48 }
 0x1cb   :  { %v791_v49 = vpop.f32.mrb[14].mxu1 }
 0x1cc   :  { %660 = vst.msk [vmem:[%s999_s3 + $0x78] sm:$0xff] %vm321_vm1, %v791_v49  ;;  %v569_v50 = vpop.f32.mrb[15].mxu1 }
 0x1cd   :  { %659 = vst.msk [vmem:[%s999_s3 + $0x70] sm:$0xff] %vm321_vm1, %v569_v50 }
 0x1cf   :  { %v794_v51 = vpop.f32.mrb[16].mxu1 }
 0x1d0   :  { %662 = vst.msk [vmem:[%s999_s3 + $0x88] sm:$0xff] %vm321_vm1, %v794_v51  ;;  %v579_v52 = vpop.f32.mrb[17].mxu1 }
 0x1d1   :  { %661 = vst.msk [vmem:[%s999_s3 + $0x80] sm:$0xff] %vm321_vm1, %v579_v52 }
 0x1d3   :  { %v797_v53 = vpop.f32.mrb[18].mxu1 }
 0x1d4   :  { %664 = vst.msk [vmem:[%s999_s3 + $0x98] sm:$0x7] %vm331_vm2, %v797_v53  ;;  %v589_v54 = vpop.f32.mrb[19].mxu1 }
 0x1d5   :  { %663 = vst.msk [vmem:[%s999_s3 + $0x90] sm:$0xff] %vm321_vm1, %v589_v54 }

</bundles_post_ra>
